<compile_context>
chip_gen: v5e
topology: v5e:2x2
jax: 0.10.0
libtpu: 0.0.40
codegen_flags: <defaults>
</compile_context>

<pallas_src>
import functools

import jax
import jax.numpy as jnp
from jax.experimental import pallas as pl
from jax.experimental.pallas import tpu as pltpu


def _angle_loss_kernel(blend_ref, y_ref, cos_ref, phi_ref, out_ref, *, gamma):
    # blend_ref: (1, 1) f32 scalar in SMEM     -- 1 / (1 + lambda)
    # y_ref:     (tile_n, 1) int32 labels (padded rows carry -1)
    # cos_ref:   (tile_n, C) cos(theta) logits
    # phi_ref:   (tile_n, C) phi(theta) margin logits
    # out_ref:   (1, 1) f32 resident accumulator (sum of per-row losses)
    pid = pl.program_id(0)

    @pl.when(pid == 0)
    def _():
        out_ref[...] = jnp.zeros_like(out_ref)

    blend = blend_ref[0, 0]
    cos_t = cos_ref[...].astype(jnp.float32)
    phi_t = phi_ref[...].astype(jnp.float32)
    y = y_ref[...]                                            # (tile_n, 1) int32

    tn, c = cos_t.shape
    lane = jax.lax.broadcasted_iota(jnp.int32, (tn, c), 1)    # class idx per lane
    onehot = lane == y                                        # scatter_(1, y, 1)
    valid = y >= 0                                            # padded rows -> False

    # output = cos_theta; output[index] += (phi - cos) / (1 + lamb)
    output = cos_t + jnp.where(onehot, (phi_t - cos_t) * blend, 0.0)

    # stable logsumexp over classes; gather target logit via the one-hot mask.
    m = jnp.max(output, axis=1, keepdims=True)
    lse = m + jnp.log(jnp.sum(jnp.exp(output - m), axis=1, keepdims=True))
    target = jnp.sum(jnp.where(onehot, output, 0.0), axis=1, keepdims=True)
    logpt = target - lse                                      # (tile_n, 1)

    if gamma == 0:
        loss_vec = -logpt
    elif isinstance(gamma, int) and gamma > 0:
        one_m_pt = 1.0 - jnp.exp(logpt)
        w = one_m_pt
        for _ in range(int(gamma) - 1):                       # VPU multiplies, no pow
            w = w * one_m_pt
        loss_vec = -w * logpt
    else:
        loss_vec = -((1.0 - jnp.exp(logpt)) ** gamma) * logpt

    loss_vec = jnp.where(valid, loss_vec, 0.0)                # mask padded rows
    out_ref[...] += jnp.sum(loss_vec).reshape(1, 1)


def _choose_tile_n(n, c):
    """Row tile: multiple of 8, capped so double-buffered tiles fit VMEM on v7x."""
    # ~2M f32 elements per input tile => <= 8 MiB/tile, <= ~32 MiB with two
    # inputs double-buffered -- safe even on v7x's 64 MiB VMEM.
    cap = max(8, ((2_000_000 // max(c, 1)) // 8) * 8)
    cap = min(cap, 1024)
    n8 = ((n + 7) // 8) * 8
    return min(cap, n8)


@functools.partial(jax.jit, static_argnames=("gamma",))
def angle_loss_fwd(cos_theta, phi_theta, y, blend, gamma=0):
    n, c = cos_theta.shape
    tile_n = _choose_tile_n(n, c)
    n_pad = ((n + tile_n - 1) // tile_n) * tile_n
    pad = n_pad - n

    y2d = jnp.reshape(y.astype(jnp.int32), (n, 1))
    if pad:
        cos_theta = jnp.pad(cos_theta, ((0, pad), (0, 0)))
        phi_theta = jnp.pad(phi_theta, ((0, pad), (0, 0)))
        y2d = jnp.pad(y2d, ((0, pad), (0, 0)), constant_values=-1)

    blend2d = jnp.reshape(jnp.asarray(blend, jnp.float32), (1, 1))
    grid_n = n_pad // tile_n

    kernel = functools.partial(_angle_loss_kernel, gamma=gamma)
    total = pl.pallas_call(
        kernel,
        out_shape=jax.ShapeDtypeStruct((1, 1), jnp.float32),
        grid=(grid_n,),
        in_specs=[
            pl.BlockSpec(memory_space=pltpu.MemorySpace.SMEM),      # blend scalar
            pl.BlockSpec((tile_n, 1), lambda i: (i, 0)),            # labels
            pl.BlockSpec((tile_n, c), lambda i: (i, 0)),            # cos_theta
            pl.BlockSpec((tile_n, c), lambda i: (i, 0)),            # phi_theta
        ],
        out_specs=pl.BlockSpec((1, 1), lambda i: (0, 0)),           # resident acc
        compiler_params=pltpu.CompilerParams(
            dimension_semantics=("arbitrary",),
            vmem_limit_bytes=48 * 1024 * 1024,
        ),
    )(blend2d, y2d, cos_theta, phi_theta)

    return total[0, 0] / n                                           # mean


class AngleLoss:
    """JAX/Pallas port of TrainAndTest/spectrogram/Contest.py::AngleLoss."""

    def __init__(self, gamma=0, lambda_min=5, lambda_max=1500):
        self.gamma = gamma
        self.it = 0
        self.lambda_min = lambda_min
        self.lambda_max = lambda_max

    def __call__(self, x, y):
        self.it += 1
        cos_theta, phi_theta = x
        lamb = max(self.lambda_min, self.lambda_max / (1 + 0.1 * self.it))
        blend = jnp.float32(1.0 / (1.0 + lamb))   # runtime scalar -> no recompile
        return angle_loss_fwd(cos_theta, phi_theta, y, blend, gamma=self.gamma)


def _reference(cos_theta, phi_theta, y, it, gamma, lambda_min, lambda_max):
    """Pure-JAX reference mirroring the PyTorch forward (for sanity check)."""
    lamb = max(lambda_min, lambda_max / (1 + 0.1 * it))
    onehot = jax.nn.one_hot(y, cos_theta.shape[1], dtype=bool)
    output = cos_theta + jnp.where(
        onehot, (phi_theta - cos_theta) / (1.0 + lamb), 0.0
    )
    logp = jax.nn.log_softmax(output, axis=1)
    logpt = jnp.sum(jnp.where(onehot, logp, 0.0), axis=1)
    pt = jnp.exp(logpt)
    return jnp.mean(-1.0 * (1.0 - pt) ** gamma * logpt)


if __name__ == "__main__":
    key = jax.random.PRNGKey(0)
    k1, k2, k3 = jax.random.split(key, 3)

    N, C = 8, 128  # batch rows x num_classes (lane-aligned)
    cos_theta = jax.random.uniform(k1, (N, C), jnp.float32, -1.0, 1.0)
    phi_theta = cos_theta - jax.random.uniform(k2, (N, C), jnp.float32, 0.0, 0.5)
    y = jax.random.randint(k3, (N,), 0, C, jnp.int32)

    # gamma = 0, two consecutive steps (blend anneals without recompile).
    loss_mod = AngleLoss(gamma=0)
    loss1 = loss_mod((cos_theta, phi_theta), y)
    loss2 = loss_mod((cos_theta, phi_theta), y)
    jax.block_until_ready((loss1, loss2))

    ref1 = _reference(cos_theta, phi_theta, y, it=1, gamma=0,
                      lambda_min=5, lambda_max=1500)
    ref2 = _reference(cos_theta, phi_theta, y, it=2, gamma=0,
                      lambda_min=5, lambda_max=1500)
    assert jnp.allclose(loss1, ref1, atol=1e-5, rtol=1e-5), (loss1, ref1)
    assert jnp.allclose(loss2, ref2, atol=1e-5, rtol=1e-5), (loss2, ref2)

    # gamma = 2 (focal weighting via repeated multiplies).
    loss_mod_g2 = AngleLoss(gamma=2)
    loss_g2 = loss_mod_g2((cos_theta, phi_theta), y)
    jax.block_until_ready(loss_g2)
    ref_g2 = _reference(cos_theta, phi_theta, y, it=1, gamma=2,
                        lambda_min=5, lambda_max=1500)
    assert jnp.allclose(loss_g2, ref_g2, atol=1e-5, rtol=1e-5), (loss_g2, ref_g2)

    print("KERNEL_OK")
</pallas_src>

<mosaic_0001>
module attributes {stable_mosaic.version = 11 : i64} {
  func.func @_angle_loss_kernel(%arg0: i32, %arg1: memref<1x1xf32, #tpu.memory_space<smem>>, %arg2: memref<8x1xi32, #tpu.memory_space<vmem>>, %arg3: memref<8x128xf32, #tpu.memory_space<vmem>>, %arg4: memref<8x128xf32, #tpu.memory_space<vmem>>, %arg5: memref<1x1xf32, #tpu.memory_space<vmem>>) attributes {dimension_semantics = [#tpu.dimension_semantics<arbitrary>], iteration_bounds = array<i64: 1>, scalar_prefetch = 0 : i64, scratch_operands = 0 : i64, tpu.core_type = #tpu.core_type<tc>, window_params = [{transform_indices = @transform_0, window_bounds = array<i64: 1, 1>}, {transform_indices = @transform_1, window_bounds = array<i64: 8, 1>}, {transform_indices = @transform_2, window_bounds = array<i64: 8, 128>}, {transform_indices = @transform_3, window_bounds = array<i64: 8, 128>}, {pipeline_mode = #tpu.pipeline_mode<synchronous>, transform_indices = @transform_4, window_bounds = array<i64: 1, 1>}]} {
    %c0_i32 = arith.constant 0 : i32
    %0 = arith.cmpi eq, %arg0, %c0_i32 : i32
    %1 = arith.extui %0 : i1 to i32
    %c0_i32_0 = arith.constant 0 : i32
    %2 = arith.cmpi ne, %1, %c0_i32_0 : i32
    scf.if %2 {
      %cst_20 = arith.constant 0.000000e+00 : f32
      %44 = vector.broadcast %cst_20 : f32 to vector<1x1xf32>
      %c0_21 = arith.constant 0 : index
      %c0_22 = arith.constant 0 : index
      %45 = vector.load %arg5[%c0_21, %c0_22] : memref<1x1xf32, #tpu.memory_space<vmem>>, vector<1x1xf32>
      tpu.vector_store %arg5[%c0_21, %c0_22], %44 {strides = array<i32>} : memref<1x1xf32, #tpu.memory_space<vmem>>, vector<1x1xf32>,
    } else {
    }
    %c0 = arith.constant 0 : index
    %c0_1 = arith.constant 0 : index
    %3 = memref.load %arg1[%c0, %c0_1] : memref<1x1xf32, #tpu.memory_space<smem>>
    %c0_2 = arith.constant 0 : index
    %c0_3 = arith.constant 0 : index
    %4 = vector.load %arg3[%c0_2, %c0_3] : memref<8x128xf32, #tpu.memory_space<vmem>>, vector<8x128xf32>
    %c0_4 = arith.constant 0 : index
    %c0_5 = arith.constant 0 : index
    %5 = vector.load %arg4[%c0_4, %c0_5] : memref<8x128xf32, #tpu.memory_space<vmem>>, vector<8x128xf32>
    %c0_6 = arith.constant 0 : index
    %c0_7 = arith.constant 0 : index
    %6 = vector.load %arg2[%c0_6, %c0_7] : memref<8x1xi32, #tpu.memory_space<vmem>>, vector<8x1xi32>
    %7 = tpu.iota {dimensions = array<i32: 1>} : vector<8x128xi32>
    %8 = vector.broadcast %6 : vector<8x1xi32> to vector<8x128xi32>
    %9 = arith.cmpi eq, %7, %8 : vector<8x128xi32>
    %c0_i32_8 = arith.constant 0 : i32
    %10 = vector.broadcast %c0_i32_8 : i32 to vector<8x1xi32>
    %11 = arith.cmpi sge, %6, %10 : vector<8x1xi32>
    %12 = arith.subf %5, %4 : vector<8x128xf32>
    %13 = vector.broadcast %3 : f32 to vector<8x128xf32>
    %14 = arith.mulf %12, %13 : vector<8x128xf32>
    %cst = arith.constant 0.000000e+00 : f32
    %15 = vector.broadcast %cst : f32 to vector<8x128xf32>
    %16 = arith.select %9, %14, %15 : vector<8x128xi1>, vector<8x128xf32>
    %17 = arith.addf %4, %16 : vector<8x128xf32>
    %cst_9 = arith.constant dense<0xFF800000> : vector<8xf32>
    %18 = vector.multi_reduction <maximumf>, %17, %cst_9 [1] : vector<8x128xf32> to vector<8xf32>
    %19 = vector.shape_cast %18 : vector<8xf32> to vector<8x1xf32>
    %20 = vector.broadcast %19 : vector<8x1xf32> to vector<8x128xf32>
    %21 = arith.subf %17, %20 : vector<8x128xf32>
    %22 = math.exp %21 : vector<8x128xf32>
    %cst_10 = arith.constant dense<0.000000e+00> : vector<8xf32>
    %23 = vector.multi_reduction <add>, %22, %cst_10 [1] : vector<8x128xf32> to vector<8xf32>
    %24 = vector.shape_cast %23 : vector<8xf32> to vector<8x1xf32>
    %25 = math.log %24 : vector<8x1xf32>
    %26 = arith.addf %19, %25 : vector<8x1xf32>
    %cst_11 = arith.constant 0.000000e+00 : f32
    %27 = vector.broadcast %cst_11 : f32 to vector<8x128xf32>
    %28 = arith.select %9, %17, %27 : vector<8x128xi1>, vector<8x128xf32>
    %cst_12 = arith.constant dense<0.000000e+00> : vector<8xf32>
    %29 = vector.multi_reduction <add>, %28, %cst_12 [1] : vector<8x128xf32> to vector<8xf32>
    %30 = vector.shape_cast %29 : vector<8xf32> to vector<8x1xf32>
    %31 = arith.subf %30, %26 : vector<8x1xf32>
    %cst_13 = arith.constant 0.000000e+00 : f32
    %32 = vector.broadcast %cst_13 : f32 to vector<8x1xf32>
    %33 = arith.subf %32, %31 : vector<8x1xf32>
    %cst_14 = arith.constant 0.000000e+00 : f32
    %34 = vector.broadcast %cst_14 : f32 to vector<8x1xf32>
    %35 = arith.select %11, %33, %34 : vector<8x1xi1>, vector<8x1xf32>
    %c0_15 = arith.constant 0 : index
    %c0_16 = arith.constant 0 : index
    %36 = vector.load %arg5[%c0_15, %c0_16] : memref<1x1xf32, #tpu.memory_space<vmem>>, vector<1x1xf32>
    %37 = vector.shape_cast %35 : vector<8x1xf32> to vector<1x8x1xf32>
    %cst_17 = arith.constant dense<0.000000e+00> : vector<1xf32>
    %38 = vector.multi_reduction <add>, %37, %cst_17 [1, 2] : vector<1x8x1xf32> to vector<1xf32>
    %39 = vector.shape_cast %38 : vector<1xf32> to vector<1x1x1xf32>
    %40 = vector.extract %39[0, 0, 0] : f32 from vector<1x1x1xf32>
    %41 = vector.broadcast %40 : f32 to vector<1x1xf32>
    %42 = arith.addf %36, %41 : vector<1x1xf32>
    %c0_18 = arith.constant 0 : index
    %c0_19 = arith.constant 0 : index
    %43 = vector.load %arg5[%c0_18, %c0_19] : memref<1x1xf32, #tpu.memory_space<vmem>>, vector<1x1xf32>
    tpu.vector_store %arg5[%c0_18, %c0_19], %42 {strides = array<i32>} : memref<1x1xf32, #tpu.memory_space<vmem>>, vector<1x1xf32>,
    return
  }
  func.func @transform_0(%arg0: i32) -> (i32, i32) {
    %c0_i32 = arith.constant 0 : i32
    %c0_i32_0 = arith.constant 0 : i32
    %c0_i32_1 = arith.constant 0 : i32
    return %c0_i32, %c0_i32_0 : i32, i32
  }
  func.func @transform_1(%arg0: i32) -> (i32, i32) {
    %c0_i32 = arith.constant 0 : i32
    %c0_i32_0 = arith.constant 0 : i32
    return %arg0, %c0_i32 : i32, i32
  }
  func.func @transform_2(%arg0: i32) -> (i32, i32) {
    %c0_i32 = arith.constant 0 : i32
    %c0_i32_0 = arith.constant 0 : i32
    return %arg0, %c0_i32 : i32, i32
  }
  func.func @transform_3(%arg0: i32) -> (i32, i32) {
    %c0_i32 = arith.constant 0 : i32
    %c0_i32_0 = arith.constant 0 : i32
    return %arg0, %c0_i32 : i32, i32
  }
  func.func @transform_4(%arg0: i32) -> (i32, i32) {
    %c0_i32 = arith.constant 0 : i32
    %c0_i32_0 = arith.constant 0 : i32
    %c0_i32_1 = arith.constant 0 : i32
    return %c0_i32, %c0_i32_0 : i32, i32
  }
}

</mosaic_0001>

<bundles_post_ra>
// kernel: angle_loss_fwd.1
= control target key start
LH: loop header
LB: loop body
LE: loop exit
PB: predicated region body
PF: predicated region fallthrough
CT: control target
= control target key end

     0   :  { %10 = vsyncpa [#allocation4], 0  ;;  %s213_s0 = inlined_call_operand.<no memory space> [shape: f32[1,1], index: 0, kind: input, shape index: {}]   ;;  %s214_s1 = inlined_call_operand.vmem [shape: s32[8,1], index: 1, kind: input, shape index: {}]   ;;  %s215_s2 = inlined_call_operand.vmem [shape: f32[8,128], index: 2, kind: input, shape index: {}]   ;;  %s216_s3 = inlined_call_operand.hbm [shape: f32[8,128], index: 3, kind: input, shape index: {}]   ;;  %s217_s4 = inlined_call_operand.hbm [shape: f32[1,1], index: 4, kind: output, shape index: {}]  }
   0x1   :  { %11 = vsyncpa [#allocation5], 0  ;;  %s23_s17 = sshll.u32 %s216_s3, 4  ;;  %s167_s18 = smov [#allocation3]   ;;  %s24_s17 = int_to_ptr.hbm [resolvable:$true] %s23_s17 }
   0x2   :  { %s25_s19 = sshll.u32 %s167_s18, 4  ;;  %s26_s19 = int_to_ptr.vmem [resolvable:$true] %s25_s19 }
   0x3   :  { %28 = dma.hbm_to_vmem [thread:$0]  %s24_s17, 128, %s26_s19, [#allocation4]  }
   0x4   :  { %163 = dma.done.wait [#allocation4], 128  }
   0x5   :  { %164 = vsyncadd [#allocation4], 4294967168  ;;  %vm37_vm0 = vcmask 0   ;;  %v168_v0 = vmov 0.0   ;;  %v169_v1 = vmov 0   ;;  %v42_v2 = vld [vmem:[%s214_s1] sm:$0xff]  ;;  %v43_v5 = vlaneseq }
   0x6   :  { %38 = vst.msk [vmem:[#allocation6] sm:$0x1] %vm37_vm0, %v168_v0  ;;  %110 = vset.pattern.permute.xlu0 %v169_v1  ;;  %v40_v3 = vld [vmem:[%s215_s2] sm:$0xff]  ;;  %v51_v7 = vstv %s213_s0  ;;  %vm49_vm2 = vcmp.ge.s32.totalorder %v42_v2, 0  ;;  %vm72_vm3 = vcmask 7168   ;;  %s170_s0 = smov [#allocation6]  }
   0x7   :  { %46 = vperm.xlu0 %110, %v42_v2   ;;  %v41_v4 = vld [vmem:[#allocation3] sm:$0xff]  ;;  %v44_v8 = vand.u32 127, %v43_v5  ;;  %s92_s1 = sshll.u32 %s170_s0, 4  ;;  %s94_s26 = sshll.u32 %s217_s4, 4  ;;  %s93_s1 = int_to_ptr.vmem [resolvable:$true] %s92_s1  ;;  %s95_s26 = int_to_ptr.hbm [resolvable:$true] %s94_s26 }
   0x8   :  { %v50_v6 = vsub.f32 %v41_v4, %v40_v3 }
   0xa   :  { %v52_v9 = vmul.f32 %v51_v7, %v50_v6 }
   0xd   :  { %v71_v34 = vld [vmem:[#allocation6] sm:$0x1] }
  0x79   :  { %v47_v10 = vpop.permute.xlu0 %46 }
  0x7a   :  { %vm48_vm1 = vcmp.eq.s32.totalorder %v44_v8, %v47_v10 }
  0x7b   :  { %v53_v11 = vsel %vm48_vm1, %v52_v9, 0.0 }
  0x7c   :  { %v54_v12 = vadd.f32 %v53_v11, %v40_v3 }
  0x7e   :  { %55 = vmax.xlane.f32.xlu0 %v54_v12  ;;  %v65_v17 = vsel %vm48_vm1, %v54_v12, 0.0 }
  0xf1   :  { %v56_v13 = vpop.xlane.xlu0 %55 }
  0xf2   :  { %v57_v14 = vsub.f32 %v54_v12, %v56_v13 }
  0xf4   :  { %v58_v15 = vmul.f32 1.442695, %v57_v14 }
  0xf6   :  { %111 = vpow2.f32 %v58_v15 }
  0xfc   :  { %v112_v16 = vpop.eup %111 }
  0xfd   :  { %60 = vadd.xlane.f32.xlu1 %v112_v16 }
 0x105   :  { %66 = vadd.xlane.f32.xlu1 %v65_v17 }
 0x170   :  { %v61_v18 = vpop.xlane.xlu1 %60 }
 0x171   :  { %113 = vlog2.f32 %v61_v18 }
 0x177   :  { %v114_v19 = vpop.eup %113 }
 0x178   :  { %v63_v20 = vmul.f32 0.6931472, %v114_v19  ;;  %v67_v22 = vpop.xlane.xlu1 %66 }
 0x17a   :  { %v64_v21 = vadd.f32 %v63_v20, %v56_v13 }
 0x17c   :  { %v68_v23 = vsub.f32 %v67_v22, %v64_v21 }
 0x17e   :  { %v69_v24 = vsub.f32 0.0, %v68_v23 }
 0x180   :  { %v70_v25 = vsel %vm49_vm2, %v69_v24, 0.0 }
 0x181   :  { %v73_v26 = vsel %vm72_vm3, %v70_v25, 0.0 }
 0x182   :  { %74 = vadd.xlane.f32.xlu2 %v73_v26 }
 0x1f5   :  { %v75_v27 = vpop.xlane.xlu2 %74 }
 0x1f6   :  { %v76_v28 = vrot.slane %v75_v27, 4 }
 0x1f8   :  { %v77_v29 = vadd.f32 %v76_v28, %v75_v27 }
 0x1fa   :  { %v78_v30 = vrot.slane %v77_v29, 2 }
 0x1fc   :  { %v79_v31 = vadd.f32 %v78_v30, %v77_v29 }
 0x1fe   :  { %v80_v32 = vrot.slane %v79_v31, 1 }
 0x200   :  { %v81_v33 = vadd.f32 %v80_v32, %v79_v31 }
 0x202   :  { %104 = vpush %v81_v33 }
 0x233   :  { %s105_s27 = spop %104 }
 0x234   :  { %v83_v35 = vstv %s105_s27 }
 0x235   :  { %v84_v36 = vadd.f32 %v83_v35, %v71_v34 }
 0x237   :  { %86 = vst.msk [vmem:[#allocation6] sm:$0x1] %vm37_vm0, %v84_v36 }
 0x238   :  { %97 = dma.vmem_to_hbm [thread:$0]  %s93_s1, 16, %s95_s26, [#allocation5]  }
 0x239   :  { %165 = dma.done.wait [#allocation5], 16  }
 0x23a   :  { %166 = vsyncadd [#allocation5], 4294967280 }
 0x23b   :  { %102 = vsyncpa [#allocation4], 1 }
 0x23c   :  { %103 = vsyncpa [#allocation5], 1 }

</bundles_post_ra>
